<compile_context>
chip_gen: v7x
topology: tpu7x:2x2x1
jax: 0.10.0
libtpu: 0.0.40
codegen_flags: <defaults>
</compile_context>

<pallas_src>
import functools

import jax
import jax.numpy as jnp
from jax import lax
from jax.experimental import pallas as pl
from jax.experimental.pallas import tpu as pltpu


def _contrastive_loss_kernel(emb_i_ref, emb_j_ref, out_ref, zs_ref, *,
                             batch_size, temperature):
    B = batch_size
    N = 2 * B
    inv_t = jnp.float32(1.0 / temperature)
    sqrt_inv_t = jnp.float32(float(1.0 / temperature) ** 0.5)
    eps = jnp.float32(1e-12)

    def normalize_scale(x):
        # F.normalize(x, dim=1) == x / max(||x||, eps) == x * rsqrt(max(||x||^2, eps^2)),
        # additionally pre-scaled by sqrt(1/T) so the matmul directly produces logits.
        x = x.astype(jnp.float32)
        sumsq = jnp.sum(x * x, axis=1, keepdims=True)
        return x * (lax.rsqrt(jnp.maximum(sumsq, eps * eps)) * sqrt_inv_t)

    zs_i = normalize_scale(emb_i_ref[...])          # (B, D) = sqrt(1/T) * z_i
    zs_j = normalize_scale(emb_j_ref[...])          # (B, D) = sqrt(1/T) * z_j

    # Sum of all 2B positive logits: sim[k, k+B]/T == (z_i[k].z_j[k])/T appears once in
    # each half of the loss sum (sim is symmetric), hence the factor 2.
    pos_sum = jnp.float32(2.0) * jnp.sum(zs_i * zs_j)

    # Stage both halves in a single (2B, D) VMEM scratch -> one MXU matmul, no
    # in-kernel sublane concatenate, no wrapper-side HBM concatenate.
    zs_ref[pl.ds(0, B), :] = zs_i
    zs_ref[pl.ds(B, B), :] = zs_j
    zs = zs_ref[...]

    # logits[i, j] = (z[i].z[j]) / T ; transposed-B contraction, no XLU transpose.
    logits = lax.dot_general(
        zs, zs,
        dimension_numbers=(((1,), (1,)), ((), ())),
        preferred_element_type=jnp.float32,
    )                                                # (2B, 2B)

    # Rows are unit-norm, so logits <= 1/T: use that compile-time constant as the
    # log-sum-exp shift instead of a per-row cross-lane max reduce.
    exp_l = jnp.exp(logits - inv_t)

    # Denominator per row: sum_{j != i} exp(logits[i, j] - 1/T). The diagonal is
    # excluded exactly with a mask (see header note on why analytic subtraction is
    # numerically unsafe here).
    row = lax.broadcasted_iota(jnp.int32, (N, N), 0)
    col = lax.broadcasted_iota(jnp.int32, (N, N), 1)
    exp_masked = jnp.where(row != col, exp_l, jnp.float32(0.0))
    denom = jnp.sum(exp_masked, axis=1, keepdims=True)            # (2B, 1)

    # log(true_denom_i) = log(denom_i) + 1/T ; loss = mean_i(-pos_i + log(true_denom_i))
    log_denom_sum = jnp.sum(jnp.log(denom)) + jnp.float32(N) * inv_t
    out_ref[0, 0] = (log_denom_sum - pos_sum) / jnp.float32(N)


def contrastive_loss(emb_i, emb_j, *, batch_size, temperature=0.05):
    B, D = emb_i.shape
    assert B == batch_size and emb_j.shape == (B, D)
    # Note: B a multiple of 8 keeps the two halves on aligned sublane slices of the
    # (2B, D) scratch (true for SimCLR batch sizes). D < 128 is handled by Mosaic's
    # lane padding; zero-padding D in the wrapper would only add HBM traffic.

    kernel = functools.partial(
        _contrastive_loss_kernel,
        batch_size=B,
        temperature=float(temperature),
    )

    out = pl.pallas_call(
        kernel,
        out_shape=jax.ShapeDtypeStruct((1, 1), jnp.float32),
        in_specs=[pl.BlockSpec(memory_space=pltpu.MemorySpace.VMEM),
                  pl.BlockSpec(memory_space=pltpu.MemorySpace.VMEM)],
        out_specs=pl.BlockSpec(memory_space=pltpu.MemorySpace.SMEM),
        scratch_shapes=[pltpu.VMEM((2 * B, D), jnp.float32)],
        # Explicit scoped-VMEM budget so moderate N also compiles on v5e (16 MiB
        # default); 32 MiB matches the v6e/v7x defaults and is safe on all three.
        compiler_params=pltpu.CompilerParams(vmem_limit_bytes=32 * 1024 * 1024),
    )(emb_i, emb_j)
    return out[0, 0]


def contrastive_loss_ref(emb_i, emb_j, batch_size, temperature=0.05):
    """Pure-JAX reference mirroring the PyTorch module."""
    def normalize(x):
        n = jnp.sqrt(jnp.sum(x * x, axis=1, keepdims=True))
        return x / jnp.maximum(n, 1e-12)

    z_i = normalize(emb_i)
    z_j = normalize(emb_j)
    z = jnp.concatenate([z_i, z_j], axis=0)
    sim = z @ z.T
    B = batch_size
    N = 2 * B
    sim_ij = jnp.diagonal(sim, offset=B)
    sim_ji = jnp.diagonal(sim, offset=-B)
    positives = jnp.concatenate([sim_ij, sim_ji], axis=0)
    nominator = jnp.exp(positives / temperature)
    neg_mask = 1.0 - jnp.eye(N, dtype=jnp.float32)
    denominator = jnp.sum(neg_mask * jnp.exp(sim / temperature), axis=1)
    loss_partial = -jnp.log(nominator / denominator)
    return jnp.sum(loss_partial) / N


if __name__ == "__main__":
    batch_size = 8
    hidden = 32
    temperature = 0.05

    key = jax.random.PRNGKey(0)
    k1, k2 = jax.random.split(key)
    emb_i = jax.random.normal(k1, (batch_size, hidden), dtype=jnp.float32)
    emb_j = jax.random.normal(k2, (batch_size, hidden), dtype=jnp.float32)

    loss = contrastive_loss(emb_i, emb_j, batch_size=batch_size,
                            temperature=temperature)
    jax.block_until_ready(loss)

    ref = contrastive_loss_ref(emb_i, emb_j, batch_size, temperature)
    assert jnp.allclose(loss, ref, rtol=1e-5, atol=1e-5), (loss, ref)

    print("KERNEL_OK")
</pallas_src>

<mosaic_0001>
module attributes {stable_mosaic.version = 11 : i64} {
  func.func @_contrastive_loss_kernel(%arg0: memref<8x32xf32, #tpu.memory_space<vmem>>, %arg1: memref<8x32xf32, #tpu.memory_space<vmem>>, %arg2: memref<1x1xf32, #tpu.memory_space<smem>>, %arg3: memref<16x32xf32, #tpu.memory_space<vmem>>) attributes {dimension_semantics = [], scalar_prefetch = 0 : i64, scratch_operands = 1 : i64, tpu.core_type = #tpu.core_type<tc>} {
    %c0 = arith.constant 0 : index
    %c0_0 = arith.constant 0 : index
    %0 = vector.load %arg0[%c0, %c0_0] : memref<8x32xf32, #tpu.memory_space<vmem>>, vector<8x32xf32>
    %1 = arith.mulf %0, %0 : vector<8x32xf32>
    %cst = arith.constant dense<0.000000e+00> : vector<8xf32>
    %2 = vector.multi_reduction <add>, %1, %cst [1] : vector<8x32xf32> to vector<8xf32>
    %3 = vector.shape_cast %2 : vector<8xf32> to vector<8x1xf32>
    %cst_1 = arith.constant 9.99999996E-13 : f32
    %cst_2 = arith.constant 9.99999996E-13 : f32
    %4 = arith.mulf %cst_1, %cst_2 : f32
    %5 = vector.broadcast %4 : f32 to vector<8x1xf32>
    %6 = arith.maximumf %3, %5 : vector<8x1xf32>
    %7 = math.rsqrt %6 : vector<8x1xf32>
    %cst_3 = arith.constant 4.47213602 : f32
    %8 = vector.broadcast %cst_3 : f32 to vector<8x1xf32>
    %9 = arith.mulf %7, %8 : vector<8x1xf32>
    %10 = vector.broadcast %9 : vector<8x1xf32> to vector<8x32xf32>
    %11 = arith.mulf %0, %10 : vector<8x32xf32>
    %c0_4 = arith.constant 0 : index
    %c0_5 = arith.constant 0 : index
    %12 = vector.load %arg1[%c0_4, %c0_5] : memref<8x32xf32, #tpu.memory_space<vmem>>, vector<8x32xf32>
    %13 = arith.mulf %12, %12 : vector<8x32xf32>
    %cst_6 = arith.constant dense<0.000000e+00> : vector<8xf32>
    %14 = vector.multi_reduction <add>, %13, %cst_6 [1] : vector<8x32xf32> to vector<8xf32>
    %15 = vector.shape_cast %14 : vector<8xf32> to vector<8x1xf32>
    %cst_7 = arith.constant 9.99999996E-13 : f32
    %cst_8 = arith.constant 9.99999996E-13 : f32
    %16 = arith.mulf %cst_7, %cst_8 : f32
    %17 = vector.broadcast %16 : f32 to vector<8x1xf32>
    %18 = arith.maximumf %15, %17 : vector<8x1xf32>
    %19 = math.rsqrt %18 : vector<8x1xf32>
    %cst_9 = arith.constant 4.47213602 : f32
    %20 = vector.broadcast %cst_9 : f32 to vector<8x1xf32>
    %21 = arith.mulf %19, %20 : vector<8x1xf32>
    %22 = vector.broadcast %21 : vector<8x1xf32> to vector<8x32xf32>
    %23 = arith.mulf %12, %22 : vector<8x32xf32>
    %24 = arith.mulf %11, %23 : vector<8x32xf32>
    %25 = vector.shape_cast %24 : vector<8x32xf32> to vector<1x8x32xf32>
    %cst_10 = arith.constant dense<0.000000e+00> : vector<1xf32>
    %26 = vector.multi_reduction <add>, %25, %cst_10 [1, 2] : vector<1x8x32xf32> to vector<1xf32>
    %27 = vector.shape_cast %26 : vector<1xf32> to vector<1x1x1xf32>
    %28 = vector.extract %27[0, 0, 0] : f32 from vector<1x1x1xf32>
    %cst_11 = arith.constant 2.000000e+00 : f32
    %29 = arith.mulf %cst_11, %28 : f32
    %c0_12 = arith.constant 0 : index
    %c0_13 = arith.constant 0 : index
    %30 = vector.load %arg3[%c0_12, %c0_13] : memref<16x32xf32, #tpu.memory_space<vmem>>, vector<8x32xf32>
    tpu.vector_store %arg3[%c0_12, %c0_13], %11 {strides = array<i32>} : memref<16x32xf32, #tpu.memory_space<vmem>>, vector<8x32xf32>,
    %c8 = arith.constant 8 : index
    %c0_14 = arith.constant 0 : index
    %31 = vector.load %arg3[%c8, %c0_14] : memref<16x32xf32, #tpu.memory_space<vmem>>, vector<8x32xf32>
    tpu.vector_store %arg3[%c8, %c0_14], %23 {strides = array<i32>} : memref<16x32xf32, #tpu.memory_space<vmem>>, vector<8x32xf32>,
    %c0_15 = arith.constant 0 : index
    %c0_16 = arith.constant 0 : index
    %32 = vector.load %arg3[%c0_15, %c0_16] : memref<16x32xf32, #tpu.memory_space<vmem>>, vector<16x32xf32>
    %cst_17 = arith.constant dense<0.000000e+00> : vector<16x16xf32>
    %33 = tpu.matmul %32, %32, %cst_17 {dimension_numbers = #tpu.dot_dimension_numbers<[1], [1], [0], [0], [0, 0, 1, 0], [], []>} : vector<16x32xf32>, vector<16x32xf32>, vector<16x16xf32> -> vector<16x16xf32>
    %cst_18 = arith.constant 2.000000e+01 : f32
    %34 = vector.broadcast %cst_18 : f32 to vector<16x16xf32>
    %35 = arith.subf %33, %34 : vector<16x16xf32>
    %36 = math.exp %35 : vector<16x16xf32>
    %37 = tpu.iota {dimensions = array<i32: 0>} : vector<16x16xi32>
    %38 = tpu.iota {dimensions = array<i32: 1>} : vector<16x16xi32>
    %39 = arith.cmpi ne, %37, %38 : vector<16x16xi32>
    %cst_19 = arith.constant 0.000000e+00 : f32
    %40 = vector.broadcast %cst_19 : f32 to vector<16x16xf32>
    %41 = arith.select %39, %36, %40 : vector<16x16xi1>, vector<16x16xf32>
    %cst_20 = arith.constant dense<0.000000e+00> : vector<16xf32>
    %42 = vector.multi_reduction <add>, %41, %cst_20 [1] : vector<16x16xf32> to vector<16xf32>
    %43 = vector.shape_cast %42 : vector<16xf32> to vector<16x1xf32>
    %44 = math.log %43 : vector<16x1xf32>
    %45 = vector.shape_cast %44 : vector<16x1xf32> to vector<1x16x1xf32>
    %cst_21 = arith.constant dense<0.000000e+00> : vector<1xf32>
    %46 = vector.multi_reduction <add>, %45, %cst_21 [1, 2] : vector<1x16x1xf32> to vector<1xf32>
    %47 = vector.shape_cast %46 : vector<1xf32> to vector<1x1x1xf32>
    %48 = vector.extract %47[0, 0, 0] : f32 from vector<1x1x1xf32>
    %cst_22 = arith.constant 1.600000e+01 : f32
    %cst_23 = arith.constant 2.000000e+01 : f32
    %49 = arith.mulf %cst_22, %cst_23 : f32
    %50 = arith.addf %48, %49 : f32
    %51 = arith.subf %50, %29 : f32
    %cst_24 = arith.constant 1.600000e+01 : f32
    %52 = arith.divf %51, %cst_24 : f32
    %c0_25 = arith.constant 0 : index
    %c0_26 = arith.constant 0 : index
    %53 = memref.load %arg2[%c0_25, %c0_26] : memref<1x1xf32, #tpu.memory_space<smem>>
    memref.store %52, %arg2[%c0_25, %c0_26] : memref<1x1xf32, #tpu.memory_space<smem>>
    return
  }
}

</mosaic_0001>

<bundles_post_ra>
// kernel: tpu_custom_call.1
= control target key start
LH: loop header
LB: loop body
LE: loop exit
PB: predicated region body
PF: predicated region fallthrough
CT: control target
= control target key end

     0   :  { %7 = vsyncpa [#allocation4], 0  ;;  %s378_s0 = inlined_call_operand.hbm [shape: f32[8,32], index: 0, kind: input, shape index: {}]   ;;  %s379_s1 = inlined_call_operand.hbm [shape: f32[8,32], index: 1, kind: input, shape index: {}]   ;;  %s380_s2 = inlined_call_operand.hbm [shape: f32[1,1], index: 2, kind: output, shape index: {}]  }
   0x1   :  { %8 = vsyncpa [#allocation7], 0 }
   0x2   :  { %9 = vsyncpa [#allocation5], 0  ;;  %s315_s9 = smov [#allocation3]   ;;  %s316_s11 = smov [#allocation6]  }
   0x3   :  { %s16_s10 = sshll.u32 %s315_s9, 4  ;;  %s26_s12 = sshll.u32 %s316_s11, 4  ;;  %s17_s10 = int_to_ptr.vmem [resolvable:$true] %s16_s10  ;;  %s27_s12 = int_to_ptr.vmem [resolvable:$true] %s26_s12 }
   0x4   :  { %s255_s15 = scalar_lea.hbm %s378_s0, 128 }
   0x5   :  { %p256_p0 = scmp.ne.s32.totalorder %s378_s0, %s255_s15  ;;  %p259_p1 = scmp.lt.u32.totalorder %s255_s15, %s378_s0 }
   0x7   :  { %p261_p2 = pnand %p259_p1, %p256_p0 }
   0x9   :  { %264 = shalt.err (!%p261_p2)
}
   0xa   :  { %s265_s20 = scalar_lea.vmem %s17_s10, 128  ;;  %p270_p4 = scmp.lt.s32.totalorder %s17_s10, %s17_s10 }
   0xb   :  { %p266_p3 = scmp.ne.s32.totalorder %s17_s10, %s265_s20  ;;  %p271_p5 = scmp.lt.s32.totalorder %s265_s20, %s265_s20 }
   0xd   :  { %p272_p6 = por %p271_p5, %p270_p4 }
   0xf   :  { %p273_p7 = pnand %p272_p6, %p266_p3 }
  0x11   :  { %276 = shalt.err (!%p273_p7)
}
  0x12   :  { %19 = dma.hbm_to_vmem [thread:$0]  %s378_s0, 128, %s17_s10, [#allocation4]  }
  0x13   :  { %s277_s25 = scalar_lea.hbm %s379_s1, 128 }
  0x14   :  { %p278_p8 = scmp.ne.s32.totalorder %s379_s1, %s277_s25  ;;  %p281_p9 = scmp.lt.u32.totalorder %s277_s25, %s379_s1 }
  0x16   :  { %p283_p10 = pnand %p281_p9, %p278_p8 }
  0x18   :  { %286 = shalt.err (!%p283_p10)
}
  0x19   :  { %s287_s30 = scalar_lea.vmem %s27_s12, 128  ;;  %p292_p12 = scmp.lt.s32.totalorder %s27_s12, %s27_s12 }
  0x1a   :  { %p288_p11 = scmp.ne.s32.totalorder %s27_s12, %s287_s30  ;;  %p293_p13 = scmp.lt.s32.totalorder %s287_s30, %s287_s30 }
  0x1c   :  { %p294_p0 = por %p293_p13, %p292_p12 }
  0x1e   :  { %p295_p1 = pnand %p294_p0, %p288_p11 }
  0x20   :  { %298 = shalt.err (!%p295_p1)
}
  0x21   :  { %29 = dma.hbm_to_vmem [thread:$0]  %s379_s1, 128, %s27_s12, [#allocation7]  }
  0x22   :  { %309 = dma.done.wait [#allocation4], 128  }
  0x23   :  { %310 = vsyncadd [#allocation4], 4294967168 }
  0x24   :  { %311 = dma.done.wait [#allocation7], 128  }
  0x25   :  { %312 = vsyncadd [#allocation7], 4294967168  ;;  %v36_v0 = vld [vmem:[#allocation3] sm:$0xff]  ;;  %vm38_vm0 = vcmask 261120   ;;  %v46_v1 = vld [vmem:[#allocation6] sm:$0xff]  ;;  %v158_v34 = vlaneseq  ;;  %vm167_vm3 = vcmask 130048  }
  0x26   :  { %v37_v2 = vmul.f32 %v36_v0, %v36_v0  ;;  %v47_v3 = vmul.f32 %v46_v1, %v46_v1  ;;  %vm231_vm1 = vmpackc.low %vm38_vm0, %vm38_vm0  ;;  %vm178_vm5 = vcmask 7168   ;;  %s299_s11 = scalar_lea.hbm %s380_s2, 16 }
  0x27   :  { %v159_v35 = vshrl.u32 %v158_v34, 7  ;;  %v162_v36 = vand.u32 127, %v158_v34  ;;  %p300_p2 = scmp.ne.s32.totalorder %s380_s2, %s299_s11  ;;  %p303_p3 = scmp.lt.u32.totalorder %s299_s11, %s380_s2 }
  0x28   :  { %v39_v4 = vsel %vm38_vm0, %v37_v2, 0.0  ;;  %v48_v5 = vsel %vm38_vm0, %v47_v3, 0.0 }
  0x29   :  { %40 = vadd.xlane.f32.xlu0 %v39_v4  ;;  %v160_v37 = vadd.s32 8, %v159_v35  ;;  %vm163_vm2 = vcmp.ne.s32.totalorder %v159_v35, %v162_v36  ;;  %p305_p4 = pnand %p303_p3, %p300_p2 }
  0x2b   :  { %vm164_vm4 = vcmp.ne.s32.totalorder %v160_v37, %v162_v36 }
  0x2d   :  { %49 = vadd.xlane.f32.xlu0 %v48_v5 }
  0xb6   :  { %v41_v6 = vpop.xlane.xlu0 %40 }
  0xb7   :  { %v42_v7 = vmax.f32 %v41_v6, 1e-24 }
  0xb9   :  { %243 = vrsqrt.f32 %v42_v7 }
  0xba   :  { %v50_v8 = vpop.xlane.xlu0 %49 }
  0xbb   :  { %v51_v9 = vmax.f32 %v50_v8, 1e-24 }
  0xbd   :  { %245 = vrsqrt.f32 %v51_v9 }
  0xc3   :  { %v244_v10 = vpop.eup %243 }
  0xc4   :  { %v44_v11 = vmul.f32 4.472136, %v244_v10 }
  0xc6   :  { %v45_v12 = vmul.f32 %v44_v11, %v36_v0 }
  0xc7   :  { %v246_v13 = vpop.eup %245 }
  0xc8   :  { %v53_v14 = vmul.f32 4.472136, %v246_v13  ;;  %67 = vst.msk [vmem:[#allocation2] sm:$0xff] %vm38_vm0, %v45_v12 }
  0xca   :  { %v54_v15 = vmul.f32 %v53_v14, %v46_v1 }
  0xcc   :  { %v55_v16 = vmul.f32 %v54_v15, %v45_v12  ;;  %68 = vst.msk [vmem:[#allocation2 + $0x8] sm:$0xff] %vm38_vm0, %v54_v15 }
  0xce   :  { %v56_v17 = vsel %vm38_vm0, %v55_v16, 0.0 }
  0xcf   :  { %57 = vadd.xlane.f32.xlu0 %v56_v17  ;;  %v69_v18 = vld [vmem:[#allocation2] sm:$0xff] }
  0xd0   :  { %227 = vmatprep.mubr.msk.f32.mxu0 %vm38_vm0, %v69_v18 }
  0xd3   :  { %v70_v19 = vld [vmem:[#allocation2 + $0x8] sm:$0xff] }
  0xd4   :  { %v230_v20 = vpack.c.bf16 %v70_v19, %v69_v18 }
  0xd6   :  { %232 = vmatprep.subr.msk.bf16.mxu0 %vm231_vm1, %v230_v20 }
  0xd7   :  { %235 = vmatpush3.bf16.xpose.msk.msra.mxu0 %vm231_vm1, %v230_v20 }
  0xde   :  { %228 = vmatmul.mubr.msk.f32.vlgmr.msra.gmra.mrb[0].mxu0 %vm38_vm0, %v70_v19 }
 0x15c   :  { %v58_v21 = vpop.xlane.xlu0 %57 }
 0x15d   :  { %v59_v22 = vrot.slane %v58_v21, 4 }
 0x15f   :  { %v60_v23 = vadd.f32 %v59_v22, %v58_v21 }
 0x161   :  { %v61_v24 = vrot.slane %v60_v23, 2 }
 0x163   :  { %v62_v25 = vadd.f32 %v61_v24, %v60_v23 }
 0x165   :  { %v63_v26 = vrot.slane %v62_v25, 1 }
 0x167   :  { %v64_v27 = vadd.f32 %v63_v26, %v62_v25 }
 0x169   :  { %236 = vpush %v64_v27 }
 0x19a   :  { %s237_s1 = spop %236 }
 0x19b   :  { %s66_s5 = smul.f32 2.0, %s237_s1 }
 0x1b1   :  { %v229_v28 = vpop.f32.mrb[0].mxu0 }
 0x1b2   :  { %v218_v29 = vadd.f32 -20.0, %v229_v28  ;;  %v143_v30 = vpop.f32.mrb[1].mxu0 }
 0x1b3   :  { %v217_v31 = vadd.f32 -20.0, %v143_v30 }
 0x1b4   :  { %v156_v32 = vmul.f32 1.442695, %v218_v29 }
 0x1b5   :  { %v154_v33 = vmul.f32 1.442695, %v217_v31 }
 0x1b6   :  { %247 = vpow2.f32 %v156_v32 }
 0x1b7   :  { %249 = vpow2.f32 %v154_v33 }
 0x1c0   :  { %v248_v38 = vpop.eup %247 }
 0x1c1   :  { %v250_v39 = vpop.eup %249  ;;  %v166_v42 = vsel %vm164_vm4, %v248_v38, 0.0 }
 0x1c2   :  { %v165_v40 = vsel %vm163_vm2, %v250_v39, 0.0  ;;  %v171_v43 = vsel %vm167_vm3, %v166_v42, 0.0 }
 0x1c3   :  { %v168_v41 = vsel %vm167_vm3, %v165_v40, 0.0 }
 0x1c4   :  { %169 = vadd.xlane.f32.xlu1 %v168_v41 }
 0x1c8   :  { %172 = vadd.xlane.f32.xlu1 %v171_v43 }
 0x251   :  { %v170_v44 = vpop.xlane.xlu1 %169 }
 0x252   :  { %251 = vlog2.f32 %v170_v44 }
 0x255   :  { %v173_v45 = vpop.xlane.xlu1 %172 }
 0x256   :  { %253 = vlog2.f32 %v173_v45 }
 0x25c   :  { %v252_v46 = vpop.eup %251 }
 0x25d   :  { %v175_v47 = vmul.f32 0.6931472, %v252_v46 }
 0x25f   :  { %v179_v50 = vsel %vm178_vm5, %v175_v47, 0.0 }
 0x260   :  { %v254_v48 = vpop.eup %253 }
 0x261   :  { %v177_v49 = vmul.f32 0.6931472, %v254_v48 }
 0x263   :  { %v180_v51 = vsel %vm178_vm5, %v177_v49, 0.0 }
 0x264   :  { %v181_v52 = vadd.f32 %v180_v51, %v179_v50 }
 0x266   :  { %182 = vadd.xlane.f32.xlu1 %v181_v52 }
 0x2f3   :  { %v183_v53 = vpop.xlane.xlu1 %182 }
 0x2f4   :  { %v184_v54 = vrot.slane %v183_v53, 4 }
 0x2f6   :  { %v185_v55 = vadd.f32 %v184_v54, %v183_v53 }
 0x2f8   :  { %v186_v56 = vrot.slane %v185_v55, 2 }
 0x2fa   :  { %v187_v57 = vadd.f32 %v186_v56, %v185_v55 }
 0x2fc   :  { %v188_v58 = vrot.slane %v187_v57, 1 }
 0x2fe   :  { %v189_v59 = vadd.f32 %v188_v58, %v187_v57 }
 0x300   :  { %238 = vpush %v189_v59 }
 0x331   :  { %s239_s4 = spop %238 }
 0x332   :  { %s191_s6 = sadd.f32 320.0, %s239_s4 }
 0x334   :  { %s192_s7 = ssub.f32 %s191_s6, %s66_s5 }
 0x336   :  { %s195_s8 = smul.f32 0.0625, %s192_s7 }
 0x338   :  { %197 = sst [smem:[#allocation8]] %s195_s8 }
 0x339   :  { %308 = shalt.err (!%p305_p4)
}
 0x33a   :  { %s317_s16 = smov [#allocation8]  }
 0x33b   :  { %205 = dma.smem_to_hbm %s317_s16, 16, %s380_s2, [#allocation5]  }
 0x33c   :  { %313 = dma.done.wait [#allocation5], 16  }
 0x33d   :  { %314 = vsyncadd [#allocation5], 4294967280 }
 0x33e   :  { %209 = sfence }
 0x33f   :  { %210 = vsyncpa [#allocation4], 1 }
 0x340   :  { %211 = vsyncpa [#allocation7], 1 }
 0x341   :  { %212 = vsyncpa [#allocation5], 1 }

</bundles_post_ra>
